<compile_context>
chip_gen: v6e
topology: v6e:2x2x1
jax: 0.10.0
libtpu: 0.0.40
codegen_flags: <defaults>
</compile_context>

<pallas_src>
import jax
import jax.numpy as jnp
from jax.experimental import pallas as pl
from jax.experimental.pallas import tpu as pltpu


_LANES = 128


def _round_up(n: int, m: int) -> int:
    return ((n + m - 1) // m) * m


def _sublane_granule(dtype) -> int:
    # Native (sublane, 128) tile minimum per dtype: f32 -> 8, bf16 -> 16, int8/fp8 -> 32.
    return max(8, 32 // jnp.dtype(dtype).itemsize)


def _device_config():
    """Per-generation (tile_rows, vmem_limit_bytes, batch-axis dimension_semantics)."""
    try:
        kind = jax.devices()[0].device_kind.lower()
    except Exception:  # pragma: no cover - no device info available
        kind = ""
    if "7" in kind:
        # v7x: 64 MiB physical VMEM, 2 TensorCores -> shard batch axis across cores.
        core_par = getattr(pltpu, "CORE_PARALLEL", "parallel")
        return 16384, 48 * 1024 * 1024, (core_par,)
    if "v6" in kind:
        # v6e: 128 MiB VMEM, ~1.4 TB/s -> bigger tiles amortize per-step overhead.
        return 16384, 48 * 1024 * 1024, ("parallel",)
    # v5e / unknown: raise the 16 MiB scoped default explicitly, keep 8192-row tiles.
    return 8192, 32 * 1024 * 1024, ("parallel",)


# --------------------------------------------------------------------------
# Kernels
# --------------------------------------------------------------------------
def _alt_flat_kernel(x_ref, e_ref, o_ref):
    # x_ref: (TM, G)     G consecutive batch rows packed per 128-lane output row
    # e_ref: (G, 128)    signed expansion matrix: E[g, l] = w_pad[l % A_pad] * (l // A_pad == g)
    # o_ref: (TM, 128)   lane-dense, row-major flattened (batch, A_pad) slab
    o_ref[...] = jnp.dot(
        x_ref[...], e_ref[...], preferred_element_type=jnp.float32
    ).astype(o_ref.dtype)


def _alt_flat_vpu_kernel(x_ref, e_ref, o_ref):
    # Same contract as above but G == 1: a rank-1 update gains nothing from
    # the MXU, keep it on the VPU as a broadcast multiply.
    o_ref[...] = (x_ref[...] * e_ref[...]).astype(o_ref.dtype)


def _alt_rowtile_kernel(x_ref, w_ref, o_ref):
    # x_ref: (TM, 1), w_ref: (1, A), o_ref: (TM, A)   (only used for A >= 128)
    o_ref[...] = (x_ref[...] * w_ref[...]).astype(o_ref.dtype)


# --------------------------------------------------------------------------
# Wrappers
# --------------------------------------------------------------------------
def _forward_lane_dense(x, w, batch, a, tile_rows, vmem_limit, semantics, out_dtype):
    itemsize = jnp.dtype(out_dtype).itemsize
    granule = _sublane_granule(out_dtype)

    # Pad A up to a divisor of 128 (divisors of 128 are powers of two).
    a_pad = a if _LANES % a == 0 else int(pl.next_power_of_2(a))
    g = _LANES // a_pad                      # batch rows packed per 128-lane output row
    rows = pl.cdiv(batch, g)                 # flattened output rows (exact, no tile rounding)

    # VMEM-aware tile: double-buffered in (tm, g) + out (tm, 128) must fit with headroom.
    budget = int(vmem_limit * 0.75)
    tm_cap = max(granule, (budget // (2 * (_LANES + g) * itemsize)) // granule * granule)
    tm = min(tile_rows, tm_cap, _round_up(rows, granule))

    xf = x.astype(out_dtype)
    batch_used = rows * g
    if batch_used != batch:                  # tiny pad: at most g-1 scalar rows
        xf = jnp.pad(xf, ((0, batch_used - batch), (0, 0)))
    xf = xf.reshape(rows, g)                 # row r holds x[r*g : (r+1)*g]

    wf = w.astype(out_dtype)
    if a_pad != a:
        wf = jnp.pad(wf, ((0, 0), (0, a_pad - a)))

    # Signed expansion matrix (tiny, built once from the learnable w):
    #   (x_tile @ e)[r, l] == x_tile[r, l // a_pad] * w_pad[l % a_pad]
    lane = jnp.arange(_LANES, dtype=jnp.int32)
    onehot = (lane[None, :] // a_pad) == jnp.arange(g, dtype=jnp.int32)[:, None]
    e = onehot.astype(out_dtype) * jnp.tile(wf[0], g)[None, :]

    kernel = _alt_flat_kernel if g > 1 else _alt_flat_vpu_kernel

    flat = pl.pallas_call(
        kernel,
        out_shape=jax.ShapeDtypeStruct((rows, _LANES), out_dtype),
        grid=(pl.cdiv(rows, tm),),           # ragged last block handled by Pallas
        in_specs=[
            pl.BlockSpec((tm, g), lambda i: (i, 0)),
            pl.BlockSpec((g, _LANES), lambda i: (0, 0)),
        ],
        out_specs=pl.BlockSpec((tm, _LANES), lambda i: (i, 0)),
        compiler_params=pltpu.CompilerParams(
            dimension_semantics=semantics,
            vmem_limit_bytes=vmem_limit,
        ),
    )(xf, e)

    out = flat.reshape(batch_used, a_pad)    # row-major compatible (free)
    if batch_used != batch or a_pad != a:
        out = out[:batch, :a]                # only when padding actually happened
    return out


def _forward_row_tiled(x, w, batch, a, tile_rows, vmem_limit, semantics, out_dtype):
    # Only used for A >= 128 that is not a multiple of 128 (block last dim == full dim).
    itemsize = jnp.dtype(out_dtype).itemsize
    granule = _sublane_granule(out_dtype)

    # VMEM-aware tile: double-buffered in (tm, 1) + out (tm, A) must fit with headroom.
    budget = int(vmem_limit * 0.75)
    tm_cap = max(granule, (budget // (2 * (a + 1) * itemsize)) // granule * granule)
    tm = min(tile_rows, tm_cap, _round_up(batch, granule))

    xf = x.astype(out_dtype)
    wf = w.astype(out_dtype)

    return pl.pallas_call(
        _alt_rowtile_kernel,
        out_shape=jax.ShapeDtypeStruct((batch, a), out_dtype),
        grid=(pl.cdiv(batch, tm),),          # exact shape, ragged last block; no pad/trim
        in_specs=[
            pl.BlockSpec((tm, 1), lambda i: (i, 0)),
            pl.BlockSpec((1, a), lambda i: (0, 0)),
        ],
        out_specs=pl.BlockSpec((tm, a), lambda i: (i, 0)),
        compiler_params=pltpu.CompilerParams(
            dimension_semantics=semantics,
            vmem_limit_bytes=vmem_limit,
        ),
    )(xf, wf)


def alternating_forward(
    x: jax.Array,
    w: jax.Array,
    *,
    tile_rows: int | None = None,
    vmem_limit_bytes: int | None = None,
    min_pallas_elements: int = 1 << 15,
) -> jax.Array:
    """y = x @ w for x:(batch, 1), w:(1, n_actions). Matches Alternating.forward."""
    assert x.ndim == 2 and x.shape[1] == 1, "x must be (batch, 1)"
    assert w.ndim == 2 and w.shape[0] == 1, "w must be (1, n_actions)"
    batch, a = x.shape[0], w.shape[1]
    out_dtype = jnp.promote_types(x.dtype, w.dtype)

    dflt_tm, dflt_vmem, semantics = _device_config()
    tile_rows = dflt_tm if tile_rows is None else tile_rows
    vmem_limit_bytes = dflt_vmem if vmem_limit_bytes is None else vmem_limit_bytes

    # Tiny problems, or A already a multiple of 128 (already lane-dense):
    # XLA's fused broadcast-multiply hits the HBM roofline by itself.
    if batch * a < min_pallas_elements or a % _LANES == 0:
        return (x * w).astype(out_dtype)

    if a < _LANES:
        return _forward_lane_dense(
            x, w, batch, a, tile_rows, vmem_limit_bytes, semantics, out_dtype
        )
    return _forward_row_tiled(
        x, w, batch, a, tile_rows, vmem_limit_bytes, semantics, out_dtype
    )


def make_alternating_weights(n_actions: int) -> jax.Array:
    """Deterministic init matching the PyTorch module: [(-1)**i for i in range(n)]."""
    vals = jnp.array([(-1.0) ** i for i in range(n_actions)], dtype=jnp.float32)
    return vals[None, :]                     # (1, n_actions)


# --------------------------------------------------------------------------
# Demo / correctness check
# --------------------------------------------------------------------------
if __name__ == "__main__":
    key = jax.random.PRNGKey(0)
    k1, k2, k3, k4, k5 = jax.random.split(key, 5)

    # 1) The module's natural tiny shape (batch=8, n_actions=4): lane-dense path.
    x1 = jax.random.normal(k1, (8, 1), dtype=jnp.float32)
    w1 = make_alternating_weights(4)
    y1 = jax.block_until_ready(alternating_forward(x1, w1, min_pallas_elements=0))
    assert y1.shape == (8, 4)
    assert jnp.allclose(y1, x1 @ w1, atol=1e-6), "mismatch (lane-dense, divisor A)"

    # 2) Multi-step ragged grid (rows not a multiple of tm), batch not multiple of g.
    x2 = jax.random.normal(k2, (500, 1), dtype=jnp.float32)
    w2 = make_alternating_weights(4)
    y2 = jax.block_until_ready(
        alternating_forward(x2, w2, tile_rows=8, min_pallas_elements=0)
    )
    assert jnp.allclose(y2, x2 @ w2, atol=1e-6), "mismatch (lane-dense, ragged grid)"

    # 3) n_actions that does not divide 128 -> lane-dense with A padded 6 -> 8.
    x3 = jax.random.normal(k3, (40, 1), dtype=jnp.float32)
    w3 = jax.random.normal(jax.random.PRNGKey(1), (1, 6), dtype=jnp.float32)
    y3 = jax.block_until_ready(
        alternating_forward(x3, w3, tile_rows=16, min_pallas_elements=0)
    )
    assert jnp.allclose(y3, x3 @ w3, atol=1e-6), "mismatch (lane-dense, padded A)"

    # 4) A >= 128, not a multiple of 128 -> row-tiled VPU kernel, ragged grid, no pad/trim.
    x4 = jax.random.normal(k4, (100, 1), dtype=jnp.float32)
    w4 = jax.random.normal(jax.random.PRNGKey(2), (1, 200), dtype=jnp.float32)
    y4 = jax.block_until_ready(alternating_forward(x4, w4, min_pallas_elements=0))
    assert jnp.allclose(y4, x4 @ w4, atol=1e-6), "mismatch (row-tiled fallback)"

    # 5) A multiple of 128 -> routed to XLA fused broadcast-multiply.
    x5 = jax.random.normal(k5, (16, 1), dtype=jnp.float32)
    w5 = make_alternating_weights(128)
    y5 = jax.block_until_ready(alternating_forward(x5, w5, min_pallas_elements=0))
    assert jnp.allclose(y5, x5 @ w5, atol=1e-6), "mismatch (XLA lane-dense route)"

    print("KERNEL_OK")
</pallas_src>

<mosaic_0001>
module attributes {stable_mosaic.version = 11 : i64} {
  func.func @_alt_flat_kernel(%arg0: i32, %arg1: memref<8x32xf32, #tpu.memory_space<vmem>>, %arg2: memref<32x128xf32, #tpu.memory_space<vmem>>, %arg3: memref<8x128xf32, #tpu.memory_space<vmem>>) attributes {dimension_semantics = [#tpu.dimension_semantics<parallel>], iteration_bounds = array<i64: 1>, scalar_prefetch = 0 : i64, scratch_operands = 0 : i64, tpu.core_type = #tpu.core_type<tc>, window_params = [{transform_indices = @transform_0, window_bounds = array<i64: 8, 32>}, {pipeline_mode = #tpu.pipeline_mode<synchronous>, transform_indices = @transform_1, window_bounds = array<i64: 32, 128>}, {transform_indices = @transform_2, window_bounds = array<i64: 8, 128>}]} {
    %c0 = arith.constant 0 : index
    %c0_0 = arith.constant 0 : index
    %0 = vector.load %arg1[%c0, %c0_0] : memref<8x32xf32, #tpu.memory_space<vmem>>, vector<8x32xf32>
    %c0_1 = arith.constant 0 : index
    %c0_2 = arith.constant 0 : index
    %1 = vector.load %arg2[%c0_1, %c0_2] : memref<32x128xf32, #tpu.memory_space<vmem>>, vector<32x128xf32>
    %cst = arith.constant dense<0.000000e+00> : vector<8x128xf32>
    %2 = tpu.matmul %0, %1, %cst {dimension_numbers = #tpu.dot_dimension_numbers<[1], [0], [0], [1], [0, 0, 1, 1], [], []>} : vector<8x32xf32>, vector<32x128xf32>, vector<8x128xf32> -> vector<8x128xf32>
    %c0_3 = arith.constant 0 : index
    %c0_4 = arith.constant 0 : index
    %3 = vector.load %arg3[%c0_3, %c0_4] : memref<8x128xf32, #tpu.memory_space<vmem>>, vector<8x128xf32>
    tpu.vector_store %arg3[%c0_3, %c0_4], %2 {strides = array<i32>} : memref<8x128xf32, #tpu.memory_space<vmem>>, vector<8x128xf32>,
    return
  }
  func.func @transform_0(%arg0: i32) -> (i32, i32) {
    %c0_i32 = arith.constant 0 : i32
    %c0_i32_0 = arith.constant 0 : i32
    return %arg0, %c0_i32 : i32, i32
  }
  func.func @transform_1(%arg0: i32) -> (i32, i32) {
    %c0_i32 = arith.constant 0 : i32
    %c0_i32_0 = arith.constant 0 : i32
    %c0_i32_1 = arith.constant 0 : i32
    return %c0_i32, %c0_i32_0 : i32, i32
  }
  func.func @transform_2(%arg0: i32) -> (i32, i32) {
    %c0_i32 = arith.constant 0 : i32
    %c0_i32_0 = arith.constant 0 : i32
    return %arg0, %c0_i32 : i32, i32
  }
}

</mosaic_0001>

<bundles_post_ra>
// kernel: tpu_custom_call.1
= control target key start
LH: loop header
LB: loop body
LE: loop exit
PB: predicated region body
PF: predicated region fallthrough
CT: control target
= control target key end

     0   :  { %7 = vsyncpa [#allocation3], 0  ;;  %s269_s0 = inlined_call_operand.hbm [shape: f32[1,32], index: 0, kind: input, shape index: {}]   ;;  %s270_s1 = inlined_call_operand.hbm [shape: f32[32,128], index: 1, kind: input, shape index: {}]   ;;  %s271_s2 = inlined_call_operand.hbm [shape: f32[1,128], index: 2, kind: output, shape index: {}]  }
   0x1   :  { %8 = vsyncpa [#allocation6], 0 }
   0x2   :  { %9 = vsyncpa [#allocation4], 0 }
   0x3   :  { %14 = vsyncadd [#allocation3], 112  ;;  %s230_s9 = smov [#allocation2]  }
   0x4   :  { %s15_s10 = sshll.u32 %s230_s9, 4  ;;  %s16_s10 = int_to_ptr.vmem [resolvable:$true] %s15_s10 }
   0x5   :  { %s172_s11 = scalar_lea.vmem %s16_s10, 16  ;;  %s176_s12 = scalar_lea.vmem %s16_s10, 128 }
   0x6   :  { %p173_p0 = scmp.ne.s32.totalorder %s16_s10, %s172_s11  ;;  %p177_p1 = scmp.lt.s32.totalorder %s16_s10, %s16_s10 }
   0x7   :  { %p178_p2 = scmp.lt.s32.totalorder %s176_s12, %s172_s11 }
   0x9   :  { %p179_p3 = por %p178_p2, %p177_p1 }
   0xb   :  { %p180_p4 = pnand %p179_p3, %p173_p0 }
   0xd   :  { %183 = shalt.err (!%p180_p4)
}
   0xe   :  { %s231_s13 = smov 16   ;;  %s232_s14 = smov 1  }
   0xf   :  { %21 = dma.hbm_to_vmem [thread:$0]  %s269_s0, 16, %s16_s10, [#allocation3], %s231_s13, %s231_s13, %s232_s14  }
  0x10   :  { %s233_s17 = smov [#allocation5]  }
  0x11   :  { %s27_s18 = sshll.u32 %s233_s17, 4  ;;  %s28_s18 = int_to_ptr.vmem [resolvable:$true] %s27_s18 }
  0x12   :  { %s192_s19 = scalar_lea.vmem %s28_s18, 512  ;;  %p197_p6 = scmp.lt.s32.totalorder %s28_s18, %s28_s18 }
  0x13   :  { %p193_p5 = scmp.ne.s32.totalorder %s28_s18, %s192_s19  ;;  %p198_p7 = scmp.lt.s32.totalorder %s192_s19, %s192_s19 }
  0x15   :  { %p199_p8 = por %p198_p7, %p197_p6 }
  0x17   :  { %p200_p9 = pnand %p199_p8, %p193_p5 }
  0x19   :  { %203 = shalt.err (!%p200_p9)
}
  0x1a   :  { %s234_s20 = smov 128   ;;  %s235_s21 = smov 8  }
  0x1b   :  { %33 = dma.hbm_to_vmem [thread:$0]  %s270_s1, 512, %s28_s18, [#allocation6], %s234_s20, %s234_s20, %s235_s21  }
  0x1c   :  { %224 = dma.done.wait [#allocation3], 128  }
  0x1d   :  { %225 = vsyncadd [#allocation3], 4294967168 }
  0x1e   :  { %226 = dma.done.wait [#allocation6], 512  }
  0x1f   :  { %227 = vsyncadd [#allocation6], 4294966784  ;;  %v236_v0 = vmov 0.0   ;;  %vm237_vm0 = vmmov 0   ;;  %v44_v1 = vld [vmem:[#allocation5 + $0x18] sm:$0xff]  ;;  %v43_v2 = vld [vmem:[#allocation5 + $0x10] sm:$0xff] }
  0x20   :  { %144 = vmatprep.subr.mxu0 %v236_v0  ;;  %152 = vmatprep.mubr.msk.f32.mxu0 %vm237_vm0, %v236_v0  ;;  %v42_v3 = vld [vmem:[#allocation5 + $0x8] sm:$0xff]  ;;  %v41_v4 = vld [vmem:[#allocation5] sm:$0xff]  ;;  %v40_v5 = vld [vmem:[#allocation2] sm:$0xff]  ;;  %vm45_vm1 = vcmask 261120  }
  0x21   :  { %145 = vmatpush3.msra.mxu0 %v44_v1 }
  0x22   :  { %146 = vmatprep.subr.mxu0 %v236_v0 }
  0x23   :  { %147 = vmatpush3.msra.mxu0 %v43_v2 }
  0x24   :  { %148 = vmatprep.subr.mxu0 %v236_v0 }
  0x25   :  { %149 = vmatpush3.msra.mxu0 %v42_v3 }
  0x26   :  { %150 = vmatprep.subr.mxu0 %v236_v0 }
  0x27   :  { %151 = vmatpush3.msra.mxu0 %v41_v4 }
  0x28   :  { %153 = vmatmul.mubr.msk.f32.vlgmr.msra.gmra.mxu0 %vm45_vm1, %v40_v5 }
  0xe8   :  { %v115_v6 = vpop.f32.mrf.mxu0 }
  0xe9   :  { %119 = vst [vmem:[#allocation7] sm:$0xff] %v115_v6 }
  0xea   :  { %v154_v7 = vpop.f32.mrf.mxu0 }
  0xeb   :  { %124 = vsyncadd [#allocation4], 112  ;;  %s238_s0 = smov [#allocation7]  }
  0xec   :  { %s125_s1 = sshll.u32 %s238_s0, 4  ;;  %s126_s1 = int_to_ptr.vmem [resolvable:$true] %s125_s1 }
  0xed   :  { %s204_s24 = scalar_lea.vmem %s126_s1, 16  ;;  %s208_s25 = scalar_lea.vmem %s126_s1, 128 }
  0xee   :  { %p205_p10 = scmp.ne.s32.totalorder %s126_s1, %s204_s24  ;;  %p209_p11 = scmp.lt.s32.totalorder %s126_s1, %s126_s1 }
  0xef   :  { %p210_p12 = scmp.lt.s32.totalorder %s208_s25, %s204_s24 }
  0xf1   :  { %p211_p13 = por %p210_p12, %p209_p11 }
  0xf3   :  { %p212_p0 = pnand %p211_p13, %p205_p10 }
  0xf5   :  { %215 = shalt.err (!%p212_p0)
}
  0xf6   :  { %131 = dma.vmem_to_hbm [thread:$0]  %s126_s1, 16, %s271_s2, [#allocation4], %s231_s13, %s231_s13, %s232_s14  }
  0xf7   :  { %228 = dma.done.wait [#allocation4], 128  }
  0xf8   :  { %229 = vsyncadd [#allocation4], 4294967168 }
  0xf9   :  { %135 = vsyncpa [#allocation3], 1 }
  0xfa   :  { %136 = vsyncpa [#allocation6], 1 }
  0xfb   :  { %137 = vsyncpa [#allocation4], 1 }

</bundles_post_ra>
